<compile_context>
chip_gen: v7x
topology: tpu7x:2x2x1
jax: 0.10.0
libtpu: 0.0.40
codegen_flags: <defaults>
</compile_context>

<pallas_src>
import jax
import jax.numpy as jnp
from jax.experimental import pallas as pl
from jax.experimental.pallas import tpu as pltpu


def _sigmoid(x):
    return 1.0 / (1.0 + jnp.exp(-x))


# --------------------------------------------------------------------------
# One-time (per model) parameter re-layout.  Review item: hoist transposes /
# bf16 casts out of the per-token decode loop.
# --------------------------------------------------------------------------
def prepare_decoder_params(params, *, mxu_dtype=jnp.float32):
    D = params["w_hh"].shape[1]
    w_attn = params["w_attn"]                      # (D, D + E)  [hidden | encoder]
    E = w_attn.shape[1] - D
    emb_dim = params["embedding"].shape[1]
    out_dim = params["w_fc"].shape[0]
    mx = mxu_dtype

    return {
        "embedding": params["embedding"].astype(jnp.float32),      # (V, emb)
        # attention
        "wh_t": jnp.transpose(w_attn[:, :D]).astype(mx),           # (D, D)
        "we_t": jnp.transpose(w_attn[:, D:]).astype(mx),           # (E, D)
        "b_attn": params["b_attn"].reshape(1, D).astype(jnp.float32),
        "v": params["v_w"].reshape(1, D).astype(jnp.float32),
        # GRU, fused: columns ordered [r | z | n] (PyTorch gate order)
        "w_ih_t": jnp.transpose(params["w_ih"]).astype(mx),        # (emb+E, 3D)
        "w_hh_t": jnp.transpose(params["w_hh"]).astype(mx),        # (D, 3D)
        "b_ih": params["b_ih"].reshape(1, 3 * D).astype(jnp.float32),
        "b_hh": params["b_hh"].reshape(1, 3 * D).astype(jnp.float32),
        # FC, fused: rows ordered [h_new | weighted | embedded]
        "wfc_t": jnp.transpose(params["w_fc"]).astype(mx),         # (D+E+emb, V)
        "b_fc": params["b_fc"].reshape(1, out_dim).astype(jnp.float32),
        "dims": (D, E, emb_dim, out_dim),
        "mxu_dtype": mx,
    }


# --------------------------------------------------------------------------
# Once-per-sequence: e_proj = encoder_outputs @ We^T  (invariant across decode
# steps, so it is NOT recomputed inside the per-token kernel).
# --------------------------------------------------------------------------
def _encoder_projection_kernel(enc_ref, we_t_ref, eproj_ref):
    Lb, Bt, E = enc_ref.shape
    D = we_t_ref.shape[1]
    e = jnp.dot(enc_ref[...].reshape(Lb * Bt, E), we_t_ref[...],
                preferred_element_type=jnp.float32)
    eproj_ref[...] = e.reshape(Lb, Bt, D)


def precompute_encoder_projection(encoder_outputs, prepped, *, block_l=None):
    """Returns (enc_cast, e_proj): enc in MXU dtype + its f32 projection."""
    L, B, E = encoder_outputs.shape
    D, E_p, _, _ = prepped["dims"]
    assert E == E_p
    enc = encoder_outputs.astype(prepped["mxu_dtype"])
    if block_l is None:
        block_l = L
    assert L % block_l == 0

    e_proj = pl.pallas_call(
        _encoder_projection_kernel,
        out_shape=jax.ShapeDtypeStruct((L, B, D), jnp.float32),
        grid_spec=pltpu.PrefetchScalarGridSpec(
            num_scalar_prefetch=0,
            grid=(L // block_l,),
            in_specs=[
                pl.BlockSpec((block_l, B, E), lambda l: (l, 0, 0)),
                pl.BlockSpec((E, D), lambda l: (0, 0)),
            ],
            out_specs=pl.BlockSpec((block_l, B, D), lambda l: (l, 0, 0)),
        ),
        compiler_params=pltpu.CompilerParams(
            dimension_semantics=("parallel",)),
    )(enc, prepped["we_t"])
    return enc, e_proj


# --------------------------------------------------------------------------
# Per-token decode-step kernel.
# Grid = (batch tiles, vocab tiles).  Attention + GRU run once per batch tile
# (vocab tile 0) into VMEM scratch; each vocab tile does one fused FC dot.
# --------------------------------------------------------------------------
def _decoder_step_kernel(
    emb_ref, hid_ref, enc_ref, eproj_ref,                 # activations
    wh_t_ref, b_attn_ref, v_ref,                          # attention params
    w_ih_t_ref, w_hh_t_ref, b_ih_ref, b_hh_ref,           # fused GRU params
    wfc_t_ref, b_fc_ref,                                  # fused FC params (vocab tile)
    pred_ref, hid_out_ref,                                # outputs
    x_fc_scratch,                                         # (Bt, D+E+emb) f32 scratch
):
    D = hid_ref.shape[1]
    mx = wh_t_ref.dtype                                   # MXU operand dtype

    @pl.when(pl.program_id(1) == 0)
    def _attention_and_gru():
        emb = emb_ref[...]                                # (Bt, emb)  f32
        hid = hid_ref[...]                                # (Bt, D)    f32
        enc = enc_ref[...].astype(jnp.float32)            # (L, Bt, E)

        # ---- Bahdanau attention (encoder projection precomputed per sequence)
        h_proj = jnp.dot(hid.astype(mx), wh_t_ref[...],
                         preferred_element_type=jnp.float32)          # (Bt, D)
        energy = jnp.tanh(eproj_ref[...] + h_proj[None, :, :]
                          + b_attn_ref[...][None, :, :])              # (L, Bt, D)
        score = jnp.sum(energy * v_ref[...][None, :, :], axis=-1)     # (L, Bt)

        m = jnp.max(score, axis=0, keepdims=True)
        ex = jnp.exp(score - m)
        denom = jnp.sum(ex, axis=0, keepdims=True)
        probs = ex / denom                                            # exact divide
        weighted = jnp.sum(probs[:, :, None] * enc, axis=0)           # (Bt, E)

        # ---- fused single GRU step (PyTorch gate order r, z, n)
        x_rnn = jnp.concatenate([emb, weighted], axis=1)              # (Bt, emb+E)
        gi = jnp.dot(x_rnn.astype(mx), w_ih_t_ref[...],
                     preferred_element_type=jnp.float32) + b_ih_ref[...]
        gh = jnp.dot(hid.astype(mx), w_hh_t_ref[...],
                     preferred_element_type=jnp.float32) + b_hh_ref[...]
        r = _sigmoid(gi[:, :D] + gh[:, :D])
        z = _sigmoid(gi[:, D:2 * D] + gh[:, D:2 * D])
        n = jnp.tanh(gi[:, 2 * D:] + r * gh[:, 2 * D:])
        h_new = (1.0 - z) * n + z * hid                               # (Bt, D)

        hid_out_ref[...] = h_new.astype(hid_out_ref.dtype)
        x_fc_scratch[...] = jnp.concatenate([h_new, weighted, emb], axis=1)

    # ---- fused output projection, one lane-dense vocab tile per grid step
    pred_ref[...] = (
        jnp.dot(x_fc_scratch[...].astype(mx), wfc_t_ref[...],
                preferred_element_type=jnp.float32)
        + b_fc_ref[...]
    ).astype(pred_ref.dtype)


def decoder_rnn_step(input_ids, decoder_hidden, enc, e_proj, prepped,
                     *, block_b=None, block_v=None):
    """One DecoderRNN step. Returns (prediction (B, V), new_hidden (B, D))."""
    L, B, E_enc = enc.shape
    D, E, emb_dim, out_dim = prepped["dims"]
    assert E_enc == E and decoder_hidden.shape == (B, D)

    # tiny per-step gather; TODO(synk): dropout is eval-mode identity
    # (stochastic training-mode dropout is not implemented in the kernel).
    emb_x = jnp.take(prepped["embedding"], input_ids, axis=0)          # (B, emb)

    if block_b is None:
        block_b = B
    if block_v is None:
        block_v = out_dim
    assert B % block_b == 0
    assert block_b == B or block_b % 8 == 0, "batch tile must be sublane-aligned"
    assert out_dim % block_v == 0
    assert block_v == out_dim or block_v % 128 == 0, "vocab tile must be lane-dense"
    nb, nv = B // block_b, out_dim // block_v

    def rep(shape):  # replicated (weight) block, constant across the grid
        return pl.BlockSpec(shape, lambda i, j, _s=shape: (0,) * len(_s))

    grid_spec = pltpu.PrefetchScalarGridSpec(
        num_scalar_prefetch=0,
        grid=(nb, nv),
        in_specs=[
            pl.BlockSpec((block_b, emb_dim), lambda i, j: (i, 0)),      # embedded
            pl.BlockSpec((block_b, D), lambda i, j: (i, 0)),            # hidden
            pl.BlockSpec((L, block_b, E), lambda i, j: (0, i, 0)),      # enc (native L,B,E)
            pl.BlockSpec((L, block_b, D), lambda i, j: (0, i, 0)),      # precomputed e_proj
            rep((D, D)), rep((1, D)), rep((1, D)),                      # attention params
            rep((emb_dim + E, 3 * D)), rep((D, 3 * D)),                 # fused GRU weights
            rep((1, 3 * D)), rep((1, 3 * D)),                           # GRU biases
            pl.BlockSpec((D + E + emb_dim, block_v), lambda i, j: (0, j)),  # FC weight tile
            pl.BlockSpec((1, block_v), lambda i, j: (0, j)),                # FC bias tile
        ],
        out_specs=(
            pl.BlockSpec((block_b, block_v), lambda i, j: (i, j)),      # prediction tile
            pl.BlockSpec((block_b, D), lambda i, j: (i, 0)),            # new hidden
        ),
        scratch_shapes=[pltpu.VMEM((block_b, D + E + emb_dim), jnp.float32)],
    )

    pred, h_new = pl.pallas_call(
        _decoder_step_kernel,
        out_shape=(
            jax.ShapeDtypeStruct((B, out_dim), jnp.float32),
            jax.ShapeDtypeStruct((B, D), jnp.float32),
        ),
        grid_spec=grid_spec,
        compiler_params=pltpu.CompilerParams(
            dimension_semantics=("parallel", "arbitrary"),
            vmem_limit_bytes=48 * 1024 * 1024),
    )(emb_x, decoder_hidden, enc, e_proj,
      prepped["wh_t"], prepped["b_attn"], prepped["v"],
      prepped["w_ih_t"], prepped["w_hh_t"], prepped["b_ih"], prepped["b_hh"],
      prepped["wfc_t"], prepped["b_fc"])

    return pred, h_new


# --------------------------------------------------------------------------
# Pure-JAX mirror of the PyTorch forward (eval mode), for checking.
# --------------------------------------------------------------------------
def _reference_forward(input_ids, decoder_hidden, encoder_outputs, params):
    D = decoder_hidden.shape[1]
    L = encoder_outputs.shape[0]
    emb = params["embedding"][input_ids]                               # (B, emb)
    hid_rep = jnp.repeat(decoder_hidden[:, None, :], L, axis=1)        # (B, L, D)
    enc_bm = jnp.transpose(encoder_outputs, (1, 0, 2))                 # (B, L, E)
    align = jnp.concatenate([hid_rep, enc_bm], axis=2)                 # (B, L, D+E)
    energy = jnp.tanh(align @ params["w_attn"].T + params["b_attn"])   # (B, L, D)
    attn = jax.nn.softmax((energy @ params["v_w"].T)[..., 0], axis=1)  # (B, L)
    weighted = jnp.einsum("bl,ble->be", attn, enc_bm)                  # (B, E)
    rnn_in = jnp.concatenate([emb, weighted], axis=1)                  # (B, emb+E)
    gi = rnn_in @ params["w_ih"].T + params["b_ih"]                    # (B, 3D)
    gh = decoder_hidden @ params["w_hh"].T + params["b_hh"]            # (B, 3D)
    r = jax.nn.sigmoid(gi[:, :D] + gh[:, :D])
    z = jax.nn.sigmoid(gi[:, D:2 * D] + gh[:, D:2 * D])
    n = jnp.tanh(gi[:, 2 * D:] + r * gh[:, 2 * D:])
    h_new = (1.0 - z) * n + z * decoder_hidden
    pred = (jnp.concatenate([h_new, weighted, emb], axis=1) @ params["w_fc"].T
            + params["b_fc"])
    return pred, h_new


if __name__ == "__main__":
    # Small, module-consistent shapes (encoder_bidirectional=True).
    B, L = 2, 8
    encoder_hid_dim = 16
    E = 2 * encoder_hid_dim        # encoder feature dim seen by the decoder = 32
    D = 32                         # decoder_hid_dim
    emb_dim = 32                   # decoder_emb_dim
    output_dim = 512               # vocab; tiled over 2 lane-dense vocab tiles
    n_steps = 3                    # short decode loop (prep hoisted outside it)

    key = jax.random.PRNGKey(0)
    keys = jax.random.split(key, 13)

    tokens = jax.random.randint(keys[0], (n_steps, B), 0, output_dim)
    decoder_hidden0 = jax.random.normal(keys[1], (B, D), dtype=jnp.float32)
    encoder_outputs = jax.random.normal(keys[2], (L, B, E), dtype=jnp.float32)

    def uniform(k, shape, fan_in):
        bound = 1.0 / jnp.sqrt(jnp.float32(fan_in))
        return jax.random.uniform(k, shape, minval=-bound, maxval=bound,
                                  dtype=jnp.float32)

    params = {
        # nn.Embedding: N(0, 1)
        "embedding": jax.random.normal(keys[3], (output_dim, emb_dim),
                                       dtype=jnp.float32),
        # attention: Linear(D + E -> D) and v: Linear(D -> 1, bias=False)
        "w_attn": uniform(keys[4], (D, D + E), D + E),
        "b_attn": uniform(keys[5], (D,), D + E),
        "v_w": uniform(keys[6], (1, D), D),
        # GRU(emb + E -> D), PyTorch layout (3D, in), gate order r, z, n
        "w_ih": uniform(keys[7], (3 * D, emb_dim + E), D),
        "w_hh": uniform(keys[8], (3 * D, D), D),
        "b_ih": uniform(keys[9], (3 * D,), D),
        "b_hh": uniform(keys[10], (3 * D,), D),
        # fc(D + E + emb -> output_dim)
        "w_fc": uniform(keys[11], (output_dim, D + E + emb_dim), D + E + emb_dim),
        "b_fc": jnp.zeros((output_dim,), dtype=jnp.float32),
    }

    # f32 path (exact, all chips) and bf16 MXU-operand path (v6e/v7x tuning).
    for mxu_dtype, tol in ((jnp.float32, 5e-3), (jnp.bfloat16, 5e-2)):
        prepped = prepare_decoder_params(params, mxu_dtype=mxu_dtype)
        enc_x, e_proj = precompute_encoder_projection(encoder_outputs, prepped)
        enc_x, e_proj = jax.block_until_ready((enc_x, e_proj))

        hid_k = decoder_hidden0
        hid_r = decoder_hidden0
        for t in range(n_steps):
            pred_k, hid_k = decoder_rnn_step(tokens[t], hid_k, enc_x, e_proj,
                                             prepped, block_v=256)
            pred_k, hid_k = jax.block_until_ready((pred_k, hid_k))
            pred_r, hid_r = _reference_forward(tokens[t], hid_r,
                                               encoder_outputs, params)
            assert pred_k.shape == (B, output_dim) and hid_k.shape == (B, D)
            assert jnp.allclose(pred_k, pred_r, atol=tol, rtol=tol), (
                f"prediction mismatch (step {t}, dtype {mxu_dtype.__name__})")
            assert jnp.allclose(hid_k, hid_r, atol=tol, rtol=tol), (
                f"hidden-state mismatch (step {t}, dtype {mxu_dtype.__name__})")

    print("KERNEL_OK")
</pallas_src>

<mosaic_0001>
module attributes {stable_mosaic.version = 11 : i64} {
  func.func @_encoder_projection_kernel(%arg0: i32, %arg1: memref<8x2x32xf32, #tpu.memory_space<vmem>>, %arg2: memref<32x32xf32, #tpu.memory_space<vmem>>, %arg3: memref<8x2x32xf32, #tpu.memory_space<vmem>>) attributes {dimension_semantics = [#tpu.dimension_semantics<parallel>], iteration_bounds = array<i64: 1>, scalar_prefetch = 0 : i64, scratch_operands = 0 : i64, tpu.core_type = #tpu.core_type<tc>, window_params = [{transform_indices = @transform_0, window_bounds = array<i64: 8, 2, 32>}, {pipeline_mode = #tpu.pipeline_mode<synchronous>, transform_indices = @transform_1, window_bounds = array<i64: 32, 32>}, {transform_indices = @transform_2, window_bounds = array<i64: 8, 2, 32>}]} {
    %c0 = arith.constant 0 : index
    %c0_0 = arith.constant 0 : index
    %c0_1 = arith.constant 0 : index
    %0 = vector.load %arg1[%c0, %c0_0, %c0_1] : memref<8x2x32xf32, #tpu.memory_space<vmem>>, vector<8x2x32xf32>
    %1 = vector.shape_cast %0 : vector<8x2x32xf32> to vector<16x32xf32>
    %c0_2 = arith.constant 0 : index
    %c0_3 = arith.constant 0 : index
    %2 = vector.load %arg2[%c0_2, %c0_3] : memref<32x32xf32, #tpu.memory_space<vmem>>, vector<32x32xf32>
    %cst = arith.constant dense<0.000000e+00> : vector<16x32xf32>
    %3 = tpu.matmul %1, %2, %cst {dimension_numbers = #tpu.dot_dimension_numbers<[1], [0], [0], [1], [0, 0, 1, 1], [], []>} : vector<16x32xf32>, vector<32x32xf32>, vector<16x32xf32> -> vector<16x32xf32>
    %4 = vector.shape_cast %3 : vector<16x32xf32> to vector<8x2x32xf32>
    %c0_4 = arith.constant 0 : index
    %c0_5 = arith.constant 0 : index
    %c0_6 = arith.constant 0 : index
    %5 = vector.load %arg3[%c0_4, %c0_5, %c0_6] : memref<8x2x32xf32, #tpu.memory_space<vmem>>, vector<8x2x32xf32>
    tpu.vector_store %arg3[%c0_4, %c0_5, %c0_6], %4 {strides = array<i32>} : memref<8x2x32xf32, #tpu.memory_space<vmem>>, vector<8x2x32xf32>,
    return
  }
  func.func @transform_0(%arg0: i32) -> (i32, i32, i32) {
    %c0_i32 = arith.constant 0 : i32
    %c0_i32_0 = arith.constant 0 : i32
    %c0_i32_1 = arith.constant 0 : i32
    return %arg0, %c0_i32, %c0_i32_0 : i32, i32, i32
  }
  func.func @transform_1(%arg0: i32) -> (i32, i32) {
    %c0_i32 = arith.constant 0 : i32
    %c0_i32_0 = arith.constant 0 : i32
    %c0_i32_1 = arith.constant 0 : i32
    return %c0_i32, %c0_i32_0 : i32, i32
  }
  func.func @transform_2(%arg0: i32) -> (i32, i32, i32) {
    %c0_i32 = arith.constant 0 : i32
    %c0_i32_0 = arith.constant 0 : i32
    %c0_i32_1 = arith.constant 0 : i32
    return %arg0, %c0_i32, %c0_i32_0 : i32, i32, i32
  }
}

</mosaic_0001>

<bundles_post_ra>
// kernel: tpu_custom_call.1
= control target key start
LH: loop header
LB: loop body
LE: loop exit
PB: predicated region body
PF: predicated region fallthrough
CT: control target
= control target key end

     0   :  { %7 = vsyncpa [#allocation3], 0  ;;  %s425_s0 = inlined_call_operand.hbm [shape: f32[8,2,32], index: 0, kind: input, shape index: {}]   ;;  %s426_s1 = inlined_call_operand.hbm [shape: f32[32,32], index: 1, kind: input, shape index: {}]   ;;  %s427_s2 = inlined_call_operand.hbm [shape: f32[8,2,32], index: 2, kind: output, shape index: {}]  }
   0x1   :  { %8 = vsyncpa [#allocation6], 0 }
   0x2   :  { %9 = vsyncpa [#allocation4], 0  ;;  %s352_s9 = smov [#allocation2]   ;;  %s280_s13 = scalar_lea.hbm %s425_s0, 256 }
   0x3   :  { %s15_s10 = sshll.u32 %s352_s9, 4  ;;  %p281_p0 = scmp.ne.s32.totalorder %s425_s0, %s280_s13  ;;  %s16_s10 = int_to_ptr.vmem [resolvable:$true] %s15_s10 }
   0x4   :  { %p284_p1 = scmp.lt.u32.totalorder %s280_s13, %s425_s0 }
   0x6   :  { %p286_p2 = pnand %p284_p1, %p281_p0 }
   0x8   :  { %289 = shalt.err (!%p286_p2)
}
   0x9   :  { %s290_s18 = scalar_lea.vmem %s16_s10, 256  ;;  %p295_p4 = scmp.lt.s32.totalorder %s16_s10, %s16_s10 }
   0xa   :  { %p291_p3 = scmp.ne.s32.totalorder %s16_s10, %s290_s18  ;;  %p296_p5 = scmp.lt.s32.totalorder %s290_s18, %s290_s18 }
   0xc   :  { %p297_p6 = por %p296_p5, %p295_p4 }
   0xe   :  { %p298_p7 = pnand %p297_p6, %p291_p3 }
  0x10   :  { %301 = shalt.err (!%p298_p7)
}
  0x11   :  { %s353_s19 = smov 32   ;;  %s354_s20 = smov 2  }
  0x12   :  { %21 = dma.hbm_to_vmem [thread:$0]  %s425_s0, 256, %s16_s10, [#allocation3], %s353_s19, %s353_s19, %s354_s20  }
  0x13   :  { %s355_s23 = smov [#allocation5]   ;;  %s302_s27 = scalar_lea.hbm %s426_s1, 512 }
  0x14   :  { %s27_s24 = sshll.u32 %s355_s23, 4  ;;  %p303_p8 = scmp.ne.s32.totalorder %s426_s1, %s302_s27  ;;  %s28_s24 = int_to_ptr.vmem [resolvable:$true] %s27_s24 }
  0x15   :  { %p306_p9 = scmp.lt.u32.totalorder %s302_s27, %s426_s1 }
  0x17   :  { %p308_p10 = pnand %p306_p9, %p303_p8 }
  0x19   :  { %311 = shalt.err (!%p308_p10)
}
  0x1a   :  { %s312_s4 = scalar_lea.vmem %s28_s24, 512  ;;  %p317_p12 = scmp.lt.s32.totalorder %s28_s24, %s28_s24 }
  0x1b   :  { %p313_p11 = scmp.ne.s32.totalorder %s28_s24, %s312_s4  ;;  %p318_p13 = scmp.lt.s32.totalorder %s312_s4, %s312_s4 }
  0x1d   :  { %p319_p0 = por %p318_p13, %p317_p12 }
  0x1f   :  { %p320_p1 = pnand %p319_p0, %p313_p11 }
  0x21   :  { %323 = shalt.err (!%p320_p1)
}
  0x22   :  { %s356_s0 = smov 128   ;;  %s357_s5 = smov 8  }
  0x23   :  { %33 = dma.hbm_to_vmem [thread:$0]  %s426_s1, 512, %s28_s24, [#allocation6], %s356_s0, %s356_s0, %s357_s5  }
  0x24   :  { %346 = dma.done.wait [#allocation3], 256  }
  0x25   :  { %347 = vsyncadd [#allocation3], 4294967040 }
  0x26   :  { %348 = dma.done.wait [#allocation6], 512  }
  0x27   :  { %349 = vsyncadd [#allocation6], 4294966784  ;;  %v65_v0 = vlaneseq  ;;  %v358_v1 = vmov 1983009808   ;;  %v48_v5 = vld [vmem:[#allocation5] sm:$0xff]  ;;  %v49_v6 = vld [vmem:[#allocation5 + $0x8] sm:$0xff] }
  0x28   :  { %v63_v2 = vunpack.c.l.s4 %v358_v1  ;;  %v50_v7 = vld [vmem:[#allocation5 + $0x10] sm:$0xff]  ;;  %v264_v9 = vpack.c.bf16 %v49_v6, %v48_v5  ;;  %v51_v10 = vld [vmem:[#allocation5 + $0x18] sm:$0xff]  ;;  %vm94_vm0 = vcmask 261120   ;;  %vm218_vm1 = vcmask 254976   ;;  %s359_s1 = smov [#allocation7]  }
  0x29   :  { %v66_v4 = vshrl.u32 %v65_v0, 7  ;;  %v40_v11 = vld [vmem:[#allocation2] sm:$0x3]  ;;  %v41_v12 = vld [vmem:[#allocation2 + $0x2] sm:$0x3]  ;;  %v268_v13 = vpack.c.bf16 %v51_v10, %v50_v7  ;;  %s232_s8 = sshll.u32 %s359_s1, 4  ;;  %s233_s8 = int_to_ptr.vmem [resolvable:$true] %s232_s8 }
  0x2a   :  { %v64_v3 = vunpack.c.0.s8 %v63_v2  ;;  %v42_v14 = vld [vmem:[#allocation2 + $0x4] sm:$0x3]  ;;  %v43_v15 = vld [vmem:[#allocation2 + $0x6] sm:$0x3]  ;;  %v60_v16 = vcombine.low %v40_v11, %v41_v12  ;;  %v44_v17 = vld [vmem:[#allocation2 + $0x8] sm:$0x3]  ;;  %265 = vmatprep.subr.bf16.mxu0 %v264_v9  ;;  %p329_p3 = scmp.lt.s32.totalorder %s233_s8, %s233_s8 }
  0x2b   :  { %v61_v18 = vcombine.low %v42_v14, %v43_v15  ;;  %v45_v19 = vld [vmem:[#allocation2 + $0xa] sm:$0x3]  ;;  %v46_v20 = vld [vmem:[#allocation2 + $0xc] sm:$0x3]  ;;  %v47_v21 = vld [vmem:[#allocation2 + $0xe] sm:$0x3]  ;;  %267 = vmatpush3.bf16.msra.mxu0 %v264_v9 }
  0x2c   :  { %v67_v8 = vsub.s32 %v64_v3, %v66_v4  ;;  %v77_v23 = vcombine.low %v44_v17, %v45_v19  ;;  %v78_v24 = vcombine.low %v46_v20, %v47_v21  ;;  %269 = vmatprep.subr.bf16.mxu0 %v268_v13  ;;  %s324_s9 = scalar_lea.vmem %s233_s8, 256 }
  0x2d   :  { %p325_p2 = scmp.ne.s32.totalorder %s233_s8, %s324_s9  ;;  %p330_p4 = scmp.lt.s32.totalorder %s324_s9, %s324_s9 }
  0x2e   :  { %v68_v22 = vrot.slane %v60_v16, %v67_v8  ;;  %v75_v25 = vrot.slane %v61_v18, %v67_v8  ;;  %v85_v26 = vrot.slane %v77_v23, %v67_v8  ;;  %v92_v27 = vrot.slane %v78_v24, %v67_v8 }
  0x2f   :  { %271 = vmatpush3.bf16.msra.mxu0 %v268_v13  ;;  %p331_p5 = por %p330_p4, %p329_p3 }
  0x30   :  { %v76_v28 = vcombine.low %v68_v22, %v75_v25  ;;  %v93_v29 = vcombine.low %v85_v26, %v92_v27 }
  0x31   :  { %p332_p6 = pnand %p331_p5, %p325_p2 }
  0x32   :  { %261 = vmatprep.mubr.msk.f32.mxu0 %vm94_vm0, %v76_v28 }
  0x33   :  { %262 = vmatmul.mubr.msk.f32.vlgmr.msra.gmra.mrb[0].mxu0 %vm94_vm0, %v93_v29 }
 0x106   :  { %v263_v30 = vpop.f32.mrb[0].mxu0 }
 0x107   :  { %v193_v31 = vcombine.high %v263_v30, %v263_v30  ;;  %v200_v32 = vrot.slane %v263_v30, %v67_v8  ;;  %v165_v33 = vpop.f32.mrb[1].mxu0 }
 0x108   :  { %v176_v34 = vcombine.high %v165_v33, %v165_v33  ;;  %v183_v35 = vrot.slane %v165_v33, %v67_v8 }
 0x109   :  { %v207_v36 = vrot.slane %v193_v31, %v67_v8  ;;  %v208_v37 = vcombine.high %v200_v32, %v200_v32  ;;  %223 = vst.msk [vmem:[#allocation7 + $0x8] sm:$0x3] %vm218_vm1, %v200_v32 }
 0x10a   :  { %v190_v38 = vrot.slane %v176_v34, %v67_v8  ;;  %v191_v39 = vcombine.high %v183_v35, %v183_v35  ;;  %219 = vst.msk [vmem:[#allocation7] sm:$0x3] %vm218_vm1, %v183_v35 }
 0x10b   :  { %v209_v40 = vcombine.high %v207_v36, %v207_v36  ;;  %224 = vst.msk [vmem:[#allocation7 + $0xa] sm:$0x3] %vm218_vm1, %v208_v37  ;;  %225 = vst.msk [vmem:[#allocation7 + $0xc] sm:$0x3] %vm218_vm1, %v207_v36 }
 0x10c   :  { %v192_v41 = vcombine.high %v190_v38, %v190_v38  ;;  %220 = vst.msk [vmem:[#allocation7 + $0x2] sm:$0x3] %vm218_vm1, %v191_v39  ;;  %221 = vst.msk [vmem:[#allocation7 + $0x4] sm:$0x3] %vm218_vm1, %v190_v38 }
 0x10d   :  { %226 = vst.msk [vmem:[#allocation7 + $0xe] sm:$0x3] %vm218_vm1, %v209_v40 }
 0x10e   :  { %222 = vst.msk [vmem:[#allocation7 + $0x6] sm:$0x3] %vm218_vm1, %v192_v41 }
 0x10f   :  { %335 = shalt.err (!%p332_p6)
}
 0x110   :  { %s336_s12 = scalar_lea.hbm %s427_s2, 256 }
 0x111   :  { %p337_p7 = scmp.ne.s32.totalorder %s427_s2, %s336_s12  ;;  %p340_p8 = scmp.lt.u32.totalorder %s336_s12, %s427_s2 }
 0x113   :  { %p342_p9 = pnand %p340_p8, %p337_p7 }
 0x115   :  { %345 = shalt.err (!%p342_p9)
}
 0x116   :  { %238 = dma.vmem_to_hbm [thread:$0]  %s233_s8, 256, %s427_s2, [#allocation4], %s353_s19, %s353_s19, %s354_s20  }
 0x117   :  { %350 = dma.done.wait [#allocation4], 256  }
 0x118   :  { %351 = vsyncadd [#allocation4], 4294967040 }
 0x119   :  { %242 = vsyncpa [#allocation3], 1 }
 0x11a   :  { %243 = vsyncpa [#allocation6], 1 }
 0x11b   :  { %244 = vsyncpa [#allocation4], 1 }

</bundles_post_ra>
